<compile_context>
chip_gen: v5e
topology: v5e:2x2
jax: 0.10.0
libtpu: 0.0.40
codegen_flags: <defaults>
</compile_context>

<pallas_src>
import functools

import jax
import jax.numpy as jnp
from jax.experimental import pallas as pl
from jax.experimental.pallas import tpu as pltpu


def _focal_loss_kernel(x_ref, t_ref, cls_ref, w_ref, loss_out, denom_out, *,
                       gamma, ignore_index, eps):
    i = pl.program_id(1)

    @pl.when(i == 0)
    def _():
        loss_out[...] = jnp.zeros_like(loss_out)
        denom_out[...] = jnp.zeros_like(denom_out)

    x = x_ref[...].astype(jnp.float32)     # (TR, 128) packed probabilities
    t = t_ref[...]                         # (TR, 128) per-lane target class id
    lane_cls = cls_ref[...]                # (1, 128)  class id owned by each lane
    w_row = w_ref[...]                     # (1, 128)  class weight per lane

    # one-hot selection mask: lane's class id == that sample's target, and not ignored.
    one_hot = jnp.logical_and(t == lane_cls, t != ignore_index)     # (TR, 128) bool
    # fused select: per-lane class weight (0 everywhere except the target lane of each
    # valid sample).  Multiplying by this zeroes every non-target / ignored lane.
    w_sel = jnp.where(one_hot, w_row, 0.0)                          # (TR, 128) f32

    focal = 1.0 - x
    g = float(gamma)
    if g.is_integer() and 0 <= int(g) <= 8:
        gi = int(g)                         # common case gamma=2 -> one VPU multiply
        if gi == 0:
            fpow = jnp.ones_like(focal)
        else:
            fpow = focal
            for _ in range(gi - 1):
                fpow = fpow * focal
    else:
        fpow = jnp.power(focal, g)          # EUP fallback for non-integer gamma

    # finite for x in [0, 1]; non-target lanes are zeroed by w_sel so their value is moot
    nll = -jnp.log(eps + x)
    loss = w_sel * fpow * nll               # (TR, 128)

    # per-lane partial sums: fold TR rows into one (8, 128) vreg with VPU adds only.
    tr = loss.shape[0]
    loss_out[...] += jnp.sum(loss.reshape(tr // 8, 8, 128), axis=0)
    denom_out[...] += jnp.sum(w_sel.reshape(tr // 8, 8, 128), axis=0)


def focal_loss(x, target, class_weights=None, *, gamma=2.0, reduction="mean",
               ignore_index=-100, eps=1e-16, rows_per_block=512, num_cores=2):
    """Pallas implementation of Focal_Loss(gamma, weights, reduction in {'mean','sum'})."""
    if reduction not in ("mean", "sum"):
        raise NotImplementedError(f"Reduction {reduction} not implemented.")
    num_classes = x.shape[-1]
    if num_classes > 128:
        raise NotImplementedError("num_classes > 128 not implemented.")

    xf = x.reshape(-1, num_classes)                       # keep native dtype (f32 or bf16)
    tf = target.reshape(-1).astype(jnp.int32)
    n = xf.shape[0]

    if class_weights is None:
        cw = jnp.ones((num_classes,), jnp.float32)
    else:
        cw = class_weights.astype(jnp.float32).reshape(num_classes)

    # pad class axis to a power of two so it divides the 128-lane vreg
    c_pad = 1
    while c_pad < num_classes:
        c_pad *= 2
    if c_pad != num_classes:
        xf = jnp.pad(xf, ((0, 0), (0, c_pad - num_classes)))
        cw = jnp.pad(cw, (0, c_pad - num_classes))
    spr = 128 // c_pad                                    # samples per packed 128-lane row

    # choose row tiling; split rows evenly across `num_cores` parallel grid slots
    rows_needed = -(-n // spr)
    rows_per_core = -(-rows_needed // num_cores)
    tr = max(8, min(rows_per_block, -(-rows_per_core // 8) * 8))
    blocks_per_core = max(1, -(-rows_per_core // tr))
    rows_pad = num_cores * blocks_per_core * tr
    n_slots = rows_pad * spr

    if n_slots != n:
        # padded samples: zero probabilities + ignore_index target -> contribute 0
        xf = jnp.pad(xf, ((0, n_slots - n), (0, 0)))
        tf = jnp.pad(tf, (0, n_slots - n), constant_values=ignore_index)

    x_packed = xf.reshape(rows_pad, 128)                               # (rows, 128)
    t_packed = jnp.repeat(tf, c_pad).reshape(rows_pad, 128)            # per-lane target id
    lane_cls = jnp.tile(jnp.arange(c_pad, dtype=jnp.int32), spr).reshape(1, 128)
    w_row = jnp.tile(cw, spr).reshape(1, 128)

    kernel = functools.partial(_focal_loss_kernel, gamma=gamma,
                               ignore_index=ignore_index, eps=eps)

    loss_parts, denom_parts = pl.pallas_call(
        kernel,
        out_shape=(jax.ShapeDtypeStruct((num_cores * 8, 128), jnp.float32),
                   jax.ShapeDtypeStruct((num_cores * 8, 128), jnp.float32)),
        grid_spec=pltpu.PrefetchScalarGridSpec(
            num_scalar_prefetch=0,
            grid=(num_cores, blocks_per_core),
            in_specs=[
                pl.BlockSpec((tr, 128), lambda p, i: (p * blocks_per_core + i, 0)),
                pl.BlockSpec((tr, 128), lambda p, i: (p * blocks_per_core + i, 0)),
                pl.BlockSpec((1, 128), lambda p, i: (0, 0)),   # lane -> class id (resident)
                pl.BlockSpec((1, 128), lambda p, i: (0, 0)),   # lane -> class weight
            ],
            out_specs=[
                pl.BlockSpec((8, 128), lambda p, i: (p, 0)),   # per-core loss partials
                pl.BlockSpec((8, 128), lambda p, i: (p, 0)),   # per-core denom partials
            ],
        ),
        compiler_params=pltpu.CompilerParams(
            dimension_semantics=("parallel", "arbitrary")),
    )(x_packed, t_packed, lane_cls, w_row)

    total_loss = jnp.sum(loss_parts)
    if reduction == "sum":
        return total_loss
    return total_loss / jnp.sum(denom_parts)


def _reference_focal_loss(x, target, class_weights, *, gamma, ignore_index, eps):
    """Pure-JAX port of the PyTorch module (reduction='mean')."""
    num_classes = x.shape[-1]
    xf = x.reshape(-1, num_classes).astype(jnp.float32)
    t = target.reshape(-1).astype(jnp.int32)
    mask = t == ignore_index
    t_clean = jnp.where(mask, 0, t)
    one_hot = jax.nn.one_hot(t_clean, num_classes, dtype=jnp.float32)
    weights = jnp.sum(one_hot * class_weights.astype(jnp.float32), axis=-1)
    pt = jnp.sum(one_hot * xf, axis=-1) * (~mask)
    focal = 1.0 - pt
    nll = -jnp.log(eps + pt)
    nll = jnp.where(mask, 0.0, nll)
    loss = weights * focal ** gamma * nll
    return loss.sum() / ((~mask) * weights).sum()


if __name__ == "__main__":
    key = jax.random.PRNGKey(0)
    k1, k2, k3 = jax.random.split(key, 3)

    B, S, C = 4, 128, 8            # batch, sequence, num classes  -> N = 512 samples
    GAMMA = 2.0
    IGNORE_INDEX = -100
    EPS = 1e-16

    logits = jax.random.normal(k1, (B, S, C), dtype=jnp.float32)
    x = jax.nn.softmax(logits, axis=-1)
    target = jax.random.randint(k2, (B, S), 0, C, dtype=jnp.int32)
    ignore_mask = jax.random.bernoulli(k3, 0.1, (B, S))
    target = jnp.where(ignore_mask, IGNORE_INDEX, target)

    class_weights = jnp.linspace(0.5, 1.5, C, dtype=jnp.float32)

    loss = focal_loss(x, target, class_weights, gamma=GAMMA,
                      ignore_index=IGNORE_INDEX, eps=EPS)
    jax.block_until_ready(loss)

    ref = _reference_focal_loss(x, target, class_weights, gamma=GAMMA,
                                ignore_index=IGNORE_INDEX, eps=EPS)

    assert jnp.allclose(loss, ref, rtol=1e-5, atol=1e-6), (loss, ref)
    print("KERNEL_OK")
</pallas_src>

<mosaic_0001>
module attributes {stable_mosaic.version = 11 : i64} {
  func.func @_focal_loss_kernel(%arg0: i32, %arg1: i32, %arg2: memref<16x128xf32, #tpu.memory_space<vmem>>, %arg3: memref<16x128xi32, #tpu.memory_space<vmem>>, %arg4: memref<1x128xi32, #tpu.memory_space<vmem>>, %arg5: memref<1x128xf32, #tpu.memory_space<vmem>>, %arg6: memref<8x128xf32, #tpu.memory_space<vmem>>, %arg7: memref<8x128xf32, #tpu.memory_space<vmem>>) attributes {dimension_semantics = [#tpu.dimension_semantics<parallel>, #tpu.dimension_semantics<arbitrary>], iteration_bounds = array<i64: 2, 1>, scalar_prefetch = 0 : i64, scratch_operands = 0 : i64, tpu.core_type = #tpu.core_type<tc>, window_params = [{transform_indices = @transform_0, window_bounds = array<i64: 16, 128>}, {transform_indices = @transform_1, window_bounds = array<i64: 16, 128>}, {pipeline_mode = #tpu.pipeline_mode<synchronous>, transform_indices = @transform_2, window_bounds = array<i64: 1, 128>}, {pipeline_mode = #tpu.pipeline_mode<synchronous>, transform_indices = @transform_3, window_bounds = array<i64: 1, 128>}, {transform_indices = @transform_4, window_bounds = array<i64: 8, 128>}, {transform_indices = @transform_5, window_bounds = array<i64: 8, 128>}]} {
    %c0_i32 = arith.constant 0 : i32
    %0 = arith.cmpi eq, %arg1, %c0_i32 : i32
    %1 = arith.extui %0 : i1 to i32
    %c0_i32_0 = arith.constant 0 : i32
    %2 = arith.cmpi ne, %1, %c0_i32_0 : i32
    scf.if %2 {
      %cst_21 = arith.constant 0.000000e+00 : f32
      %36 = vector.broadcast %cst_21 : f32 to vector<8x128xf32>
      %c0_22 = arith.constant 0 : index
      %c0_23 = arith.constant 0 : index
      %37 = vector.load %arg6[%c0_22, %c0_23] : memref<8x128xf32, #tpu.memory_space<vmem>>, vector<8x128xf32>
      tpu.vector_store %arg6[%c0_22, %c0_23], %36 {strides = array<i32>} : memref<8x128xf32, #tpu.memory_space<vmem>>, vector<8x128xf32>,
      %cst_24 = arith.constant 0.000000e+00 : f32
      %38 = vector.broadcast %cst_24 : f32 to vector<8x128xf32>
      %c0_25 = arith.constant 0 : index
      %c0_26 = arith.constant 0 : index
      %39 = vector.load %arg7[%c0_25, %c0_26] : memref<8x128xf32, #tpu.memory_space<vmem>>, vector<8x128xf32>
      tpu.vector_store %arg7[%c0_25, %c0_26], %38 {strides = array<i32>} : memref<8x128xf32, #tpu.memory_space<vmem>>, vector<8x128xf32>,
    } else {
    }
    %c0 = arith.constant 0 : index
    %c0_1 = arith.constant 0 : index
    %3 = vector.load %arg2[%c0, %c0_1] : memref<16x128xf32, #tpu.memory_space<vmem>>, vector<16x128xf32>
    %c0_2 = arith.constant 0 : index
    %c0_3 = arith.constant 0 : index
    %4 = vector.load %arg3[%c0_2, %c0_3] : memref<16x128xi32, #tpu.memory_space<vmem>>, vector<16x128xi32>
    %c0_4 = arith.constant 0 : index
    %c0_5 = arith.constant 0 : index
    %5 = vector.load %arg4[%c0_4, %c0_5] : memref<1x128xi32, #tpu.memory_space<vmem>>, vector<1x128xi32>
    %c0_6 = arith.constant 0 : index
    %c0_7 = arith.constant 0 : index
    %6 = vector.load %arg5[%c0_6, %c0_7] : memref<1x128xf32, #tpu.memory_space<vmem>>, vector<1x128xf32>
    %7 = vector.broadcast %5 : vector<1x128xi32> to vector<16x128xi32>
    %8 = arith.cmpi eq, %4, %7 : vector<16x128xi32>
    %c-100_i32 = arith.constant -100 : i32
    %9 = vector.broadcast %c-100_i32 : i32 to vector<16x128xi32>
    %10 = arith.cmpi ne, %4, %9 : vector<16x128xi32>
    %11 = arith.andi %8, %10 : vector<16x128xi1>
    %cst = arith.constant 0.000000e+00 : f32
    %12 = vector.shape_cast %6 : vector<1x128xf32> to vector<1x128xf32>
    %13 = vector.broadcast %12 : vector<1x128xf32> to vector<16x128xf32>
    %14 = vector.broadcast %cst : f32 to vector<16x128xf32>
    %15 = arith.select %11, %13, %14 : vector<16x128xi1>, vector<16x128xf32>
    %cst_8 = arith.constant 1.000000e+00 : f32
    %16 = vector.broadcast %cst_8 : f32 to vector<16x128xf32>
    %17 = arith.subf %16, %3 : vector<16x128xf32>
    %18 = arith.mulf %17, %17 : vector<16x128xf32>
    %cst_9 = arith.constant 1.000000e-16 : f32
    %19 = vector.broadcast %cst_9 : f32 to vector<16x128xf32>
    %20 = arith.addf %19, %3 : vector<16x128xf32>
    %21 = math.log %20 : vector<16x128xf32>
    %cst_10 = arith.constant 0.000000e+00 : f32
    %22 = vector.broadcast %cst_10 : f32 to vector<16x128xf32>
    %23 = arith.subf %22, %21 : vector<16x128xf32>
    %24 = arith.mulf %15, %18 : vector<16x128xf32>
    %25 = arith.mulf %24, %23 : vector<16x128xf32>
    %c0_11 = arith.constant 0 : index
    %c0_12 = arith.constant 0 : index
    %26 = vector.load %arg6[%c0_11, %c0_12] : memref<8x128xf32, #tpu.memory_space<vmem>>, vector<8x128xf32>
    %27 = vector.shape_cast %25 : vector<16x128xf32> to vector<2x8x128xf32>
    %cst_13 = arith.constant dense<0.000000e+00> : vector<8x128xf32>
    %28 = vector.multi_reduction <add>, %27, %cst_13 [0] : vector<2x8x128xf32> to vector<8x128xf32>
    %29 = arith.addf %26, %28 : vector<8x128xf32>
    %c0_14 = arith.constant 0 : index
    %c0_15 = arith.constant 0 : index
    %30 = vector.load %arg6[%c0_14, %c0_15] : memref<8x128xf32, #tpu.memory_space<vmem>>, vector<8x128xf32>
    tpu.vector_store %arg6[%c0_14, %c0_15], %29 {strides = array<i32>} : memref<8x128xf32, #tpu.memory_space<vmem>>, vector<8x128xf32>,
    %c0_16 = arith.constant 0 : index
    %c0_17 = arith.constant 0 : index
    %31 = vector.load %arg7[%c0_16, %c0_17] : memref<8x128xf32, #tpu.memory_space<vmem>>, vector<8x128xf32>
    %32 = vector.shape_cast %15 : vector<16x128xf32> to vector<2x8x128xf32>
    %cst_18 = arith.constant dense<0.000000e+00> : vector<8x128xf32>
    %33 = vector.multi_reduction <add>, %32, %cst_18 [0] : vector<2x8x128xf32> to vector<8x128xf32>
    %34 = arith.addf %31, %33 : vector<8x128xf32>
    %c0_19 = arith.constant 0 : index
    %c0_20 = arith.constant 0 : index
    %35 = vector.load %arg7[%c0_19, %c0_20] : memref<8x128xf32, #tpu.memory_space<vmem>>, vector<8x128xf32>
    tpu.vector_store %arg7[%c0_19, %c0_20], %34 {strides = array<i32>} : memref<8x128xf32, #tpu.memory_space<vmem>>, vector<8x128xf32>,
    return
  }
  func.func @transform_0(%arg0: i32, %arg1: i32) -> (i32, i32) {
    %c1_i32 = arith.constant 1 : i32
    %0 = arith.muli %arg0, %c1_i32 : i32
    %1 = arith.addi %0, %arg1 : i32
    %c0_i32 = arith.constant 0 : i32
    %c0_i32_0 = arith.constant 0 : i32
    return %1, %c0_i32 : i32, i32
  }
  func.func @transform_1(%arg0: i32, %arg1: i32) -> (i32, i32) {
    %c1_i32 = arith.constant 1 : i32
    %0 = arith.muli %arg0, %c1_i32 : i32
    %1 = arith.addi %0, %arg1 : i32
    %c0_i32 = arith.constant 0 : i32
    %c0_i32_0 = arith.constant 0 : i32
    return %1, %c0_i32 : i32, i32
  }
  func.func @transform_2(%arg0: i32, %arg1: i32) -> (i32, i32) {
    %c0_i32 = arith.constant 0 : i32
    %c0_i32_0 = arith.constant 0 : i32
    %c0_i32_1 = arith.constant 0 : i32
    return %c0_i32, %c0_i32_0 : i32, i32
  }
  func.func @transform_3(%arg0: i32, %arg1: i32) -> (i32, i32) {
    %c0_i32 = arith.constant 0 : i32
    %c0_i32_0 = arith.constant 0 : i32
    %c0_i32_1 = arith.constant 0 : i32
    return %c0_i32, %c0_i32_0 : i32, i32
  }
  func.func @transform_4(%arg0: i32, %arg1: i32) -> (i32, i32) {
    %c0_i32 = arith.constant 0 : i32
    %c0_i32_0 = arith.constant 0 : i32
    return %arg0, %c0_i32 : i32, i32
  }
  func.func @transform_5(%arg0: i32, %arg1: i32) -> (i32, i32) {
    %c0_i32 = arith.constant 0 : i32
    %c0_i32_0 = arith.constant 0 : i32
    return %arg0, %c0_i32 : i32, i32
  }
}

</mosaic_0001>

<bundles_post_ra>
// kernel: tpu_custom_call.1
= control target key start
LH: loop header
LB: loop body
LE: loop exit
PB: predicated region body
PF: predicated region fallthrough
CT: control target
= control target key end

     0   :  { %s1025_s0 = inlined_call_operand.hbm [shape: f32[32,128], index: 0, kind: input, shape index: {}]   ;;  %s1026_s1 = inlined_call_operand.hbm [shape: s32[32,128], index: 1, kind: input, shape index: {}]   ;;  %s1027_s2 = inlined_call_operand.vmem [shape: s32[1,128], index: 2, kind: input, shape index: {}]   ;;  %s1028_s3 = inlined_call_operand.vmem [shape: f32[1,128], index: 3, kind: input, shape index: {}]   ;;  %s1029_s4 = inlined_call_operand.hbm [shape: f32[16,128], index: 4, kind: output, shape index: {0}]   ;;  %s1030_s5 = inlined_call_operand.hbm [shape: f32[16,128], index: 5, kind: output, shape index: {1}]  }
   0x1   :  { %1033 = sst [smem:[#allocation16_spill]] %s1025_s0 }
   0x2   :  { %11 = vsyncpa [#allocation3], 0 }
   0x3   :  { %13 = vsyncpa [#allocation3 + $0x1], 0 }
   0x4   :  { %14 = vsyncpa [#allocation6], 0 }
   0x5   :  { %16 = vsyncpa [#allocation6 + $0x1], 0 }
   0x6   :  { %17 = vsyncpa [#allocation4], 0 }
   0x7   :  { %19 = vsyncpa [#allocation4 + $0x1], 0 }
   0x8   :  { %20 = vsyncpa [#allocation9], 0 }
   0x9   :  { %22 = vsyncpa [#allocation9 + $0x1], 0  ;;  %s855_s18 = smov 0   ;;  %s857_s19 = smov 0  }
   0xa   :  { %s859_s20 = smov 0   ;;  %s861_s21 = smov 0  }
   0xb   :  { %s863_s22 = smov 0   ;;  %s865_s23 = smov 0  }
   0xc LB: > { %1034 = sst [smem:[#allocation14_spill]] %s817_s22  ;;  %s539_s24 = sadd.s32 4294967295, %s821_s23   ;;  %s821_s23 = sphi %s865_s23, %s28_s23   ;;  %s817_s22 = sphi %s863_s22, %s1043_s22   ;;  %s813_s21 = sphi %s861_s21, %s1042_s21   ;;  %s809_s20 = sphi %s859_s20, %s1046_s20   ;;  %s805_s19 = sphi %s857_s19, %s1045_s19   ;;  %s801_s18 = sphi %s855_s18, %s1044_s18  }
   0xd   : > { %s540_s25 = sadd.s32 4294967294, %s821_s23   ;;  %s40_s26 = sadd.s32 1, %s817_s22 }
   0xe   : > { %s49_s27 = sadd.s32 1, %s809_s20  ;;  %p42_p0 = scmp.ge.s32.totalorder %s40_s26, 2 }
   0xf   : > { %p56_p1 = scmp.ne.s32.totalorder %s809_s20, %s805_s19  ;;  %p57_p2 = scmp.eq.s32.totalorder %s821_s23, 0 }
  0x10   : > { %p62_p3 = scmp.ne.s32.totalorder %s805_s19, %s801_s18  ;;  %s1048_s26 = smov (%p42_p0, %s40_s26), 0 }
  0x11   : > { %1035 = sst [smem:[#allocation15_spill]] %s1048_s26  ;;  %p896_p4 = por %p57_p2, %p56_p1 }
  0x12   : > { %p63_p5 = scmp.eq.s32.totalorder %s539_s24, 0  ;;  %s46_s29 = ssub.s32 %s817_s22, %s1048_s26 }
  0x13   : > { %p156_p6 = scmp.eq.s32.totalorder %s539_s24, 1  ;;  %p47_p7 = scmp.eq.s32.totalorder %s46_s29, 0 }
  0x14   : > { %p902_p8 = por %p63_p5, %p62_p3  ;;  %p162_p10 = scmp.eq.s32.totalorder %s540_s25, 1 }
  0x15   : > { %p906_p9 = por %p156_p6, %p56_p1  ;;  %p542_p12 = scmp.ge.s32.totalorder %s821_s23, 2 }
  0x16   : > { %s911_s7 = scalar_select %p47_p7, %s809_s20, %s49_s27  }
  0x17   : > { %p913_p11 = por %p162_p10, %p62_p3  ;;  %p584_p13 = scmp.lt.s32.totalorder %s821_s23, 2 }
  0x18   : > { %s920_s9 = sand.u32 1, %s809_s20   ;;  %s560_s11 = sshll.u32 %s817_s22, 4 }
  0x19   : > { %s543_s10 = sshll.u32 %s920_s9, 4  ;;  %s1040_s0 = sld [smem:[#allocation16_spill]] }
  0x1a   : > { %s218_s15 = scalar_lea.vmem [#allocation2], %s543_s10  ;;  %p929_p0 = pnand %p584_p13, %p896_p4 }
  0x1b   : > { %s227_s16 = sshll.u32 %s218_s15, 4  ;;  %p549_p1 = scmp.ge.s32.totalorder %s821_s23, 1  ;;  %s228_s16 = int_to_ptr.vmem [resolvable:$true] %s227_s16 }
  0x1c   : > { %s215_s25 = scalar_lea.sflag [#allocation3], %s920_s9  ;;  %s823_s27 = smov 128  }
  0x1d   : > { %s824_s29 = smov 8   ;;  %p258_p2 = scmp.lt.s32.totalorder %s821_s23, 3 }
  0x1e   : > { %s241_s28 = scalar_lea.vmem [#allocation5], %s543_s10  ;;  %s238_s26 = scalar_lea.sflag [#allocation6], %s920_s9 }
  0x1f   : > { %s224_s14 = scalar_lea.hbm %s1040_s0, %s560_s11  ;;  %p259_p3 = pnand %p549_p1, %p258_p2 }
  0x20   : > { %s225_s17 = sshll.u32 %s224_s14, 4  ;;  %s247_s14 = scalar_lea.hbm %s1026_s1, %s560_s11  ;;  %s226_s17 = int_to_ptr.hbm [resolvable:$true] %s225_s17 }
  0x21   : > { %573 = dma.hbm_to_vmem [thread:$0]  (!%p929_p0), %s226_s17, 256, %s228_s16, %s215_s25, %s823_s27, %s823_s27, %s824_s29  }
  0x22   : > { %s248_s15 = sshll.u32 %s247_s14, 4  ;;  %s250_s0 = sshll.u32 %s241_s28, 4  ;;  %s249_s15 = int_to_ptr.hbm [resolvable:$true] %s248_s15  ;;  %s251_s0 = int_to_ptr.vmem [resolvable:$true] %s250_s0 }
  0x23   : > { %576 = dma.hbm_to_vmem [thread:$0]  (!%p929_p0), %s249_s15, 256, %s251_s0, %s238_s26, %s823_s27, %s823_s27, %s824_s29  }
  0x24   : > { %262 = sbr.rel (%p259_p3) target bundleno = 75 (0x4b), region = 36  ;;  %s945_s22 = sand.u32 (!%p259_p3), 1, %s805_s19  }
  0x25   : > { %s550_s16 = sshll.u32 (!%p259_p3), %s945_s22, 4  ;;  %s265_s17 = scalar_lea.sflag (!%p259_p3), [#allocation3], %s945_s22 }
  0x26   : > { %s268_s25 = scalar_lea.vmem (!%p259_p3), [#allocation2], %s550_s16 }
  0x29   : > { %784 = dma.done.wait (%p902_p8), %s265_s17, 256  }
  0x2a   : > { %786 = vsyncadd (%p902_p8), %s265_s17, 4294967040  ;;  %s275_s9 = scalar_lea.sflag [#allocation6], %s945_s22  ;;  %s278_s10 = scalar_lea.vmem [#allocation5], %s550_s16 }
  0x2b   : > { %788 = dma.done.wait (%p902_p8), %s275_s9, 256  }
  0x2c   : > { %790 = vsyncadd (%p902_p8), %s275_s9, 4294967040  ;;  %s552_s0 = sshll.u32 %s945_s22, 3  ;;  %v326_v0 = vld [vmem:[%s268_s25] sm:$0xff]  ;;  %v327_v1 = vld [vmem:[%s268_s25 + $0x8] sm:$0xff]  ;;  %s556_s26 = sshll.u32 %s813_s21, 3 }
  0x2d   : > { %v328_v2 = vld [vmem:[%s278_s10] sm:$0xff]  ;;  %v329_v3 = vld [vmem:[%s278_s10 + $0x8] sm:$0xff]  ;;  %v348_v6 = vadd.f32 1e-16, %v326_v0  ;;  %v349_v7 = vadd.f32 1e-16, %v327_v1  ;;  %s398_s13 = scalar_lea.hbm %s1030_s5, %s556_s26 }
  0x2e   : > { %v637_v4 = vld [vmem:[%s1027_s2] ss:$0 sm:$0xff]  ;;  %vm335_vm0 = vcmp.ne.s32.totalorder %v328_v2, 4294967196  ;;  %vm336_vm1 = vcmp.ne.s32.totalorder %v329_v3, 4294967196  ;;  %v344_v8 = vsub.f32 1.0, %v326_v0  ;;  %v345_v9 = vsub.f32 1.0, %v327_v1 }
  0x2f   : > { %v638_v5 = vld [vmem:[%s1028_s3] ss:$0 sm:$0xff]  ;;  %vm333_vm2 = vcmp.eq.s32.totalorder %v328_v2, %v637_v4  ;;  %vm334_vm3 = vcmp.eq.s32.totalorder %v329_v3, %v637_v4  ;;  %639 = vlog2.f32 %v348_v6  ;;  %s315_s14 = scalar_lea.vmem [#allocation8], %s552_s0  ;;  %s402_s28 = sshll.u32 %s398_s13, 4  ;;  %s403_s28 = int_to_ptr.hbm [resolvable:$true] %s402_s28 }
  0x30   : > { %vm337_vm4 = vmand %vm333_vm2, %vm335_vm0  ;;  %641 = vlog2.f32 %v349_v7  ;;  %s400_s15 = sshll.u32 %s315_s14, 4  ;;  %v346_v12 = vmul.f32 %v344_v8, %v344_v8  ;;  %v347_v14 = vmul.f32 %v345_v9, %v345_v9  ;;  %s374_s16 = scalar_lea.sflag [#allocation9], %s945_s22  ;;  %s401_s15 = int_to_ptr.vmem [resolvable:$true] %s400_s15 }
  0x31   : > { %vm338_vm5 = vmand %vm334_vm3, %vm336_vm1  ;;  %v342_v10 = vsel %vm337_vm4, %v638_v5, 0.0  ;;  %s717_s17 = sshra.s32 %s403_s28, 4  ;;  %s723_s11 = scalar_lea.hbm %s1030_s5, 16  ;;  %s718_s17 = int_to_ptr.hbm [resolvable:$true] %s717_s17 }
  0x32   : > { %v343_v11 = vsel %vm338_vm5, %v638_v5, 0.0  ;;  %v356_v18 = vmul.f32 %v346_v12, %v342_v10  ;;  %s719_s25 = scalar_lea.hbm %s718_s17, 8  ;;  %p724_p7 = scmp.lt.s32.totalorder %s718_s17, %s1030_s5 }
  0x33   : > { %v365_v13 = vadd.f32 %v343_v11, %v342_v10  ;;  %v357_v20 = vmul.f32 %v347_v14, %v343_v11  ;;  %p720_p4 = scmp.ne.s32.totalorder %s718_s17, %s719_s25  ;;  %p725_p8 = scmp.lt.s32.totalorder %s723_s11, %s719_s25 }
  0x35   : > { %v640_v15 = vpop.eup %639  ;;  %367 = vst [vmem:[%s315_s14] sm:$0xff] %v365_v13  ;;  %p721_p5 = pnand %p720_p4, %p906_p9  ;;  %p726_p10 = por %p725_p8, %p724_p7 }
  0x36   : > { %v642_v16 = vpop.eup %641  ;;  %v351_v17 = vmul.f32 0.6931472, %v640_v15 }
  0x37   : > { %v353_v19 = vmul.f32 0.6931472, %v642_v16  ;;  %p722_p6 = pneg %p721_p5 }
  0x39   : > { %p727_p13 = pnand %p726_p10, %p722_p6 }
  0x3b   : > { %730 = shalt.err (!%p727_p13)
}
  0x3c   : > { %567 = dma.vmem_to_hbm [thread:$0]  (%p906_p9), %s401_s15, 128, %s403_s28, %s374_s16   ;;  %v354_v21 = vsub.f32 0.0, %v351_v17  ;;  %v355_v22 = vsub.f32 0.0, %v353_v19 }
  0x3d   : > { %s384_s12 = scalar_lea.hbm %s1029_s4, %s556_s26  ;;  %s308_s13 = scalar_lea.vmem [#allocation7], %s552_s0 }
  0x3e   : > { %v358_v23 = vmul.f32 %v356_v18, %v354_v21  ;;  %v359_v24 = vmul.f32 %v357_v20, %v355_v22  ;;  %s386_s14 = sshll.u32 %s308_s13, 4  ;;  %s388_s17 = sshll.u32 %s384_s12, 4  ;;  %s387_s14 = int_to_ptr.vmem [resolvable:$true] %s386_s14  ;;  %s389_s17 = int_to_ptr.hbm [resolvable:$true] %s388_s17 }
  0x3f   : > { %s369_s25 = scalar_lea.sflag [#allocation4], %s945_s22  ;;  %s745_s15 = sshra.s32 %s389_s17, 4  ;;  %s746_s15 = int_to_ptr.hbm [resolvable:$true] %s745_s15 }
  0x40   : > { %v361_v25 = vadd.f32 %v359_v24, %v358_v23  ;;  %s747_s28 = scalar_lea.hbm %s746_s15, 8  ;;  %s751_s16 = scalar_lea.hbm %s1029_s4, 16 }
  0x41   : > { %p748_p0 = scmp.ne.s32.totalorder %s746_s15, %s747_s28  ;;  %p752_p3 = scmp.lt.s32.totalorder %s746_s15, %s1029_s4 }
  0x42   : > { %363 = vst [vmem:[%s308_s13] sm:$0xff] %v361_v25  ;;  %p753_p4 = scmp.lt.s32.totalorder %s751_s16, %s747_s28 }
  0x43   : > { %p749_p1 = pnand %p748_p0, %p906_p9 }
  0x44   : > { %p754_p5 = por %p753_p4, %p752_p3 }
  0x45   : > { %p750_p2 = pneg %p749_p1 }
  0x47   : > { %p755_p6 = pnand %p754_p5, %p750_p2 }
  0x49   : > { %758 = shalt.err (!%p755_p6)
}
  0x4a   : > { %566 = dma.vmem_to_hbm [thread:$0]  (%p906_p9), %s387_s14, 128, %s389_s17, %s369_s25  }
  0x4b PF: > { %s414_s22 = sand.u32 1, %s801_s18   ;;  %p578_p7 = pnand %p542_p12, %p913_p11 }
  0x4c   : > { %s415_s10 = scalar_lea.sflag [#allocation4], %s414_s22 }
  0x4d   : > { %p579_p8 = pneg %p578_p7 }
  0x4f   : > { %792 = dma.done.wait (%p579_p8), %s415_s10, 128  }
  0x50   : > { %794 = vsyncadd (%p579_p8), %s415_s10, 4294967168  ;;  %s425_s11 = scalar_lea.sflag [#allocation9], %s414_s22 }
  0x51   : > { %796 = dma.done.wait (%p579_p8), %s425_s11, 128  }
  0x52   : > { %798 = vsyncadd (%p579_p8), %s425_s11, 4294967168  ;;  %s28_s23 = sadd.s32 1, %s821_s23   ;;  %s1042_s21 = sld [smem:[#allocation14_spill]] }
  0x53   : > { %p25_p10 = scmp.ge.s32.totalorder %s28_s23, 4   ;;  %s1043_s22 = sld [smem:[#allocation15_spill]] }
  0x54   : > { %s1044_s18 = smov %s805_s19  ;;  %s1045_s19 = smov %s809_s20 }
  0x55   : > { %s1046_s20 = smov %s911_s7  ;;  %27 = sbr.rel (!%p25_p10) target bundleno = 12 (0xc), region = 115 }
  0x5a   :  { %431 = vsyncpa [#allocation3], 1 }
  0x5b   :  { %433 = vsyncpa [#allocation3 + $0x1], 1 }
  0x5c   :  { %434 = vsyncpa [#allocation6], 1 }
  0x5d   :  { %436 = vsyncpa [#allocation6 + $0x1], 1 }
  0x5e   :  { %437 = vsyncpa [#allocation4], 1 }
  0x5f   :  { %439 = vsyncpa [#allocation4 + $0x1], 1 }
  0x60   :  { %440 = vsyncpa [#allocation9], 1 }
  0x61   :  { %442 = vsyncpa [#allocation9 + $0x1], 1 }

</bundles_post_ra>
